<compile_context>
chip_gen: v7x
topology: tpu7x:2x2x1
jax: 0.10.0
libtpu: 0.0.40
codegen_flags: <defaults>
</compile_context>

<pallas_src>
import jax
import jax.numpy as jnp
from jax.experimental import pallas as pl
from jax.experimental.pallas import tpu as pltpu

# ---- small stand-in hyperparameters (siglip-base uses 768 / t5-base 768) ----
PATCH = 8            # conv patch size / stride
HIDDEN = 128         # vision hidden dim (lane-dense)
TXT_HIDDEN = 128     # text hidden dim
LATENT = 128         # shared latent dim of SigLIPLoss
VOCAB = 256          # toy vocabulary
NUM_CLASSES = 2      # cls_head = nn.Linear(hidden, 2)
IMG = 16             # image spatial size
MAX_TEXT_LEN = 8     # toy text length

NUM_PATCHES = (IMG // PATCH) ** 2     # 4 patches per image
PATCH_DIM = 3 * PATCH * PATCH         # 192 (C * p * p)
HEAD_W = 256                          # combined (cls | pad | img_proj) head width
IMG_Z_COL = 128                       # img projection occupies cols [128, 128+LATENT)

_VMEM = pl.BlockSpec(memory_space=pltpu.MemorySpace.VMEM)
_SMEM = pl.BlockSpec(memory_space=pltpu.MemorySpace.SMEM)


# ----------------------------- Pallas kernels -------------------------------
def _vision_tower_kernel(patches_ref, pool_sel_ref, pw_ref, pb_ref, pos_ref,
                         g_ref, b_ref, hw_ref, hb_ref, out_ref, x_sc):
    """Fused vision tower.

    patch-embed matmul -> +pos_emb (broadcast over batch in-kernel) ->
    post-LayerNorm -> {token-0 select, mean-pool} via a single selector
    matmul -> combined (cls | img_proj) head matmul.  Single lane-dense
    f32 store of shape [2B, 256]; rows [0,B) carry cls logits (cols 0:2),
    rows [B,2B) carry the image projection (cols 128:256).
    """
    bp = patches_ref.shape[0]
    b = bp // NUM_PATCHES

    # Patch embedding (MXU: bf16 in, f32 accumulate).
    x = jnp.dot(patches_ref[...].astype(jnp.bfloat16), pw_ref[...],
                preferred_element_type=jnp.float32) + pb_ref[...]

    # Positional embedding added in-kernel (no jnp.tile / HBM round trip).
    x_sc[...] = x
    for bb in range(b):
        lo, hi = bb * NUM_PATCHES, (bb + 1) * NUM_PATCHES
        x_sc[lo:hi, :] = x_sc[lo:hi, :] + pos_ref[...]
    x = x_sc[...]

    # Post-LayerNorm.
    mu = jnp.mean(x, axis=-1, keepdims=True)
    var = jnp.mean((x - mu) ** 2, axis=-1, keepdims=True)
    x = (x - mu) * jax.lax.rsqrt(var + 1e-6) * g_ref[...] + b_ref[...]

    # Token-0 selection + mean pooling as one tiny matmul (rides the MXU):
    #   rows [0,B)  = last_hidden[:, 0]
    #   rows [B,2B) = mean over patches
    head_in = jnp.dot(pool_sel_ref[...], x.astype(jnp.bfloat16),
                      preferred_element_type=jnp.float32)

    # Combined classification + image-projection head (lane-dense 256 cols).
    out_ref[...] = jnp.dot(head_in.astype(jnp.bfloat16), hw_ref[...],
                           preferred_element_type=jnp.float32) + hb_ref[...]


def vision_tower(patches, pool_sel, params):
    bp = patches.shape[0]
    b = bp // NUM_PATCHES
    return pl.pallas_call(
        _vision_tower_kernel,
        out_shape=jax.ShapeDtypeStruct((2 * b, HEAD_W), jnp.float32),
        in_specs=[_VMEM] * 9,
        out_specs=_VMEM,
        scratch_shapes=[pltpu.VMEM((bp, HIDDEN), jnp.float32)],
    )(patches, pool_sel, params["patch_w"], params["patch_b"],
      params["pos_emb"], params["ln_g"], params["ln_b"],
      params["head_w"], params["head_b"])


def _text_loss_kernel(ids_ref, mask_ref, emb_ref, tw_ref, tb_ref,
                      head_ref, scale_ref, bias_ref, loss_ref, pooled_sc):
    """Fused text tower + SigLIP sigmoid loss.

    Token rows are gathered from the VMEM-resident embedding table with
    dynamic sublane slices driven by SMEM token ids (no one-hot matmul),
    masked-mean pooled, projected, L2-normalized and contracted against the
    (already projected) image embeddings to form the pairwise sigmoid loss.
    """
    b, t_len = ids_ref.shape

    # Embedding gather + masked mean pooling.
    for bb in range(b):
        acc = jnp.zeros((1, TXT_HIDDEN), jnp.float32)
        cnt = jnp.int32(0)
        for tt in range(t_len):
            m_i = mask_ref[bb, tt]
            row = emb_ref[pl.ds(ids_ref[bb, tt], 1), :]        # [1, TXT_HIDDEN]
            acc = acc + m_i.astype(jnp.float32) * row
            cnt = cnt + m_i
        den = jnp.maximum(cnt.astype(jnp.float32), 1.0)
        pooled_sc[bb:bb + 1, :] = acc / den
    pooled = pooled_sc[...]                                    # [B, TXT_HIDDEN]

    # Text projection (lane-dense LATENT=128 output, stays in registers).
    zt = jnp.dot(pooled.astype(jnp.bfloat16), tw_ref[...],
                 preferred_element_type=jnp.float32) + tb_ref[...]

    # Image embeddings: slice the combined vision-head output in-kernel.
    zi = head_ref[b:2 * b, IMG_Z_COL:IMG_Z_COL + LATENT]       # [B, LATENT]

    # L2 normalize both embeddings.
    zi = zi * jax.lax.rsqrt(jnp.sum(zi * zi, axis=-1, keepdims=True) + 1e-12)
    zt = zt * jax.lax.rsqrt(jnp.sum(zt * zt, axis=-1, keepdims=True) + 1e-12)

    # Pairwise logits without an explicit transpose (contract last dims).
    logits = jax.lax.dot_general(zi, zt, (((1,), (1,)), ((), ())),
                                 preferred_element_type=jnp.float32)
    logits = logits * jnp.exp(scale_ref[...]) + bias_ref[...]

    row_idx = jax.lax.broadcasted_iota(jnp.int32, (b, b), 0)
    col_idx = jax.lax.broadcasted_iota(jnp.int32, (b, b), 1)
    labels = jnp.where(row_idx == col_idx, 1.0, -1.0)
    # -log_sigmoid(labels * logits) == softplus(-labels * logits)
    per = jnp.logaddexp(0.0, -labels * logits)
    per_row = jnp.sum(per, axis=1, keepdims=True)              # [B, 1]
    loss_ref[...] = jnp.sum(per_row, axis=0, keepdims=True) / b


def text_tower_and_loss(input_ids, attention_mask, head_out, params):
    b = input_ids.shape[0]
    loss = pl.pallas_call(
        _text_loss_kernel,
        out_shape=jax.ShapeDtypeStruct((1, 1), jnp.float32),
        in_specs=[_SMEM, _SMEM, _VMEM, _VMEM, _VMEM, _VMEM, _VMEM, _VMEM],
        out_specs=_VMEM,
        scratch_shapes=[pltpu.VMEM((b, TXT_HIDDEN), jnp.float32)],
    )(input_ids.astype(jnp.int32), attention_mask.astype(jnp.int32),
      params["tok_emb"], params["txt_proj_w"], params["txt_proj_b"],
      head_out, params["logit_scale"], params["logit_bias"])
    return loss[0, 0]


# ------------------------------ parameters ----------------------------------
def init_params(key):
    ks = jax.random.split(key, 6)
    s = 0.02
    cls_w = s * jax.random.normal(ks[2], (HIDDEN, NUM_CLASSES), jnp.float32)
    img_proj_w = s * jax.random.normal(ks[3], (HIDDEN, LATENT), jnp.float32)
    # Combined lane-dense head: cols [0, NUM_CLASSES) = cls head,
    # cols [IMG_Z_COL, IMG_Z_COL + LATENT) = image projection, rest zero-pad.
    head_w = jnp.zeros((HIDDEN, HEAD_W), jnp.float32)
    head_w = head_w.at[:, :NUM_CLASSES].set(cls_w)
    head_w = head_w.at[:, IMG_Z_COL:IMG_Z_COL + LATENT].set(img_proj_w)
    return {
        # vision patch-embedding (Conv2d(3, HIDDEN, PATCH, PATCH) as matmul)
        "patch_w": (s * jax.random.normal(ks[0], (PATCH_DIM, HIDDEN),
                                          jnp.float32)).astype(jnp.bfloat16),
        "patch_b": jnp.zeros((1, HIDDEN), jnp.float32),
        "pos_emb": s * jax.random.normal(ks[1], (NUM_PATCHES, HIDDEN), jnp.float32),
        "ln_g": jnp.ones((1, HIDDEN), jnp.float32),
        "ln_b": jnp.zeros((1, HIDDEN), jnp.float32),
        # packed cls_head + img projection
        "head_w": head_w.astype(jnp.bfloat16),
        "head_b": jnp.zeros((1, HEAD_W), jnp.float32),
        # text tower: token embedding table (gathered in-kernel) + projection
        "tok_emb": s * jax.random.normal(ks[4], (VOCAB, TXT_HIDDEN), jnp.float32),
        "txt_proj_w": (s * jax.random.normal(ks[5], (TXT_HIDDEN, LATENT),
                                             jnp.float32)).astype(jnp.bfloat16),
        "txt_proj_b": jnp.zeros((1, LATENT), jnp.float32),
        # SigLIP learnable temperature (log-scale) and bias, standard init
        "logit_scale": jnp.full((1, 1), jnp.log(10.0), jnp.float32),
        "logit_bias": jnp.full((1, 1), -10.0, jnp.float32),
    }


# ------------------------------- forward ------------------------------------
def siglip_model_forward(params, images, input_ids, attention_mask):
    # images arrive NCHW (PyTorch convention); unfold to patch rows
    # [B*P, C*p*p] ordered (C, kh, kw) to match Conv2d weight flattening.
    B, C, H, W = images.shape
    p = PATCH
    gh, gw = H // p, W // p
    P = gh * gw

    patches = (
        images.reshape(B, C, gh, p, gw, p)
        .transpose(0, 2, 4, 1, 3, 5)
        .reshape(B * P, C * p * p)
    )

    # Constant selector/pooling matrix (shape-only; constant-folded by XLA):
    # rows [0,B) pick patch 0 of each image ("[:, 0]" token for cls head),
    # rows [B,2B) average the patches of each image (pool='mean').
    sel = jnp.zeros((B, B * P), jnp.float32)
    sel = sel.at[jnp.arange(B), jnp.arange(B) * P].set(1.0)
    pool = jnp.repeat(jnp.eye(B, dtype=jnp.float32), P, axis=1) / P
    pool_sel = jnp.concatenate([sel, pool], axis=0).astype(jnp.bfloat16)

    # --- fused vision tower + heads (1 pallas_call) ---
    head_out = vision_tower(patches, pool_sel, params)          # [2B, 256]
    cls_logits = head_out[:B, :NUM_CLASSES]                     # nn.Linear(768, 2)

    # --- fused text tower + SigLIP alignment loss (1 pallas_call) ---
    align_loss = text_tower_and_loss(input_ids, attention_mask, head_out, params)
    return cls_logits, align_loss


# --------------------------------- main --------------------------------------
if __name__ == "__main__":
    key = jax.random.PRNGKey(0)
    k_param, k_img, k_ids = jax.random.split(key, 3)

    params = init_params(k_param)

    B = 2
    images = jax.random.normal(k_img, (B, 3, IMG, IMG), jnp.float32)        # NCHW
    input_ids = jax.random.randint(k_ids, (B, MAX_TEXT_LEN), 0, VOCAB, jnp.int32)
    attention_mask = jnp.array(
        [[1, 1, 1, 1, 1, 1, 0, 0],
         [1, 1, 1, 1, 0, 0, 0, 0]], dtype=jnp.int32
    )

    fwd = jax.jit(siglip_model_forward)
    cls_logits, align_loss = fwd(params, images, input_ids, attention_mask)
    cls_logits = jax.block_until_ready(cls_logits)
    align_loss = jax.block_until_ready(align_loss)

    assert cls_logits.shape == (B, NUM_CLASSES)
    assert align_loss.shape == ()
    assert bool(jnp.all(jnp.isfinite(cls_logits))) and bool(jnp.isfinite(align_loss))
    print("KERNEL_OK")
</pallas_src>

<mosaic_0001>
module attributes {stable_mosaic.version = 11 : i64} {
  func.func @_vision_tower_kernel(%arg0: memref<8x192xf32, #tpu.memory_space<vmem>>, %arg1: memref<4x8xbf16, #tpu.memory_space<vmem>>, %arg2: memref<192x128xbf16, #tpu.memory_space<vmem>>, %arg3: memref<1x128xf32, #tpu.memory_space<vmem>>, %arg4: memref<4x128xf32, #tpu.memory_space<vmem>>, %arg5: memref<1x128xf32, #tpu.memory_space<vmem>>, %arg6: memref<1x128xf32, #tpu.memory_space<vmem>>, %arg7: memref<128x256xbf16, #tpu.memory_space<vmem>>, %arg8: memref<1x256xf32, #tpu.memory_space<vmem>>, %arg9: memref<4x256xf32, #tpu.memory_space<vmem>>, %arg10: memref<8x128xf32, #tpu.memory_space<vmem>>) attributes {dimension_semantics = [], scalar_prefetch = 0 : i64, scratch_operands = 1 : i64, tpu.core_type = #tpu.core_type<tc>} {
    %c0 = arith.constant 0 : index
    %c0_0 = arith.constant 0 : index
    %0 = vector.load %arg0[%c0, %c0_0] : memref<8x192xf32, #tpu.memory_space<vmem>>, vector<8x192xf32>
    %1 = arith.truncf %0 : vector<8x192xf32> to vector<8x192xbf16>
    %c0_1 = arith.constant 0 : index
    %c0_2 = arith.constant 0 : index
    %2 = vector.load %arg2[%c0_1, %c0_2] : memref<192x128xbf16, #tpu.memory_space<vmem>>, vector<192x128xbf16>
    %cst = arith.constant dense<0.000000e+00> : vector<8x128xf32>
    %3 = tpu.matmul %1, %2, %cst {dimension_numbers = #tpu.dot_dimension_numbers<[1], [0], [0], [1], [0, 0, 1, 1], [], []>} : vector<8x192xbf16>, vector<192x128xbf16>, vector<8x128xf32> -> vector<8x128xf32>
    %c0_3 = arith.constant 0 : index
    %c0_4 = arith.constant 0 : index
    %4 = vector.load %arg3[%c0_3, %c0_4] : memref<1x128xf32, #tpu.memory_space<vmem>>, vector<1x128xf32>
    %5 = vector.broadcast %4 : vector<1x128xf32> to vector<8x128xf32>
    %6 = arith.addf %3, %5 : vector<8x128xf32>
    %c0_5 = arith.constant 0 : index
    %c0_6 = arith.constant 0 : index
    %7 = vector.load %arg10[%c0_5, %c0_6] : memref<8x128xf32, #tpu.memory_space<vmem>>, vector<8x128xf32>
    tpu.vector_store %arg10[%c0_5, %c0_6], %6 {strides = array<i32>} : memref<8x128xf32, #tpu.memory_space<vmem>>, vector<8x128xf32>,
    %c0_7 = arith.constant 0 : index
    %c0_8 = arith.constant 0 : index
    %8 = vector.load %arg10[%c0_7, %c0_8] : memref<8x128xf32, #tpu.memory_space<vmem>>, vector<4x128xf32>
    %c0_9 = arith.constant 0 : index
    %c0_10 = arith.constant 0 : index
    %9 = vector.load %arg4[%c0_9, %c0_10] : memref<4x128xf32, #tpu.memory_space<vmem>>, vector<4x128xf32>
    %10 = arith.addf %8, %9 : vector<4x128xf32>
    %c0_11 = arith.constant 0 : index
    %c0_12 = arith.constant 0 : index
    %11 = vector.load %arg10[%c0_11, %c0_12] : memref<8x128xf32, #tpu.memory_space<vmem>>, vector<4x128xf32>
    tpu.vector_store %arg10[%c0_11, %c0_12], %10 {strides = array<i32>} : memref<8x128xf32, #tpu.memory_space<vmem>>, vector<4x128xf32>,
    %c4 = arith.constant 4 : index
    %c0_13 = arith.constant 0 : index
    %12 = vector.load %arg10[%c4, %c0_13] : memref<8x128xf32, #tpu.memory_space<vmem>>, vector<4x128xf32>
    %c0_14 = arith.constant 0 : index
    %c0_15 = arith.constant 0 : index
    %13 = vector.load %arg4[%c0_14, %c0_15] : memref<4x128xf32, #tpu.memory_space<vmem>>, vector<4x128xf32>
    %14 = arith.addf %12, %13 : vector<4x128xf32>
    %c4_16 = arith.constant 4 : index
    %c0_17 = arith.constant 0 : index
    %15 = vector.load %arg10[%c4_16, %c0_17] : memref<8x128xf32, #tpu.memory_space<vmem>>, vector<4x128xf32>
    tpu.vector_store %arg10[%c4_16, %c0_17], %14 {strides = array<i32>} : memref<8x128xf32, #tpu.memory_space<vmem>>, vector<4x128xf32>,
    %c0_18 = arith.constant 0 : index
    %c0_19 = arith.constant 0 : index
    %16 = vector.load %arg10[%c0_18, %c0_19] : memref<8x128xf32, #tpu.memory_space<vmem>>, vector<8x128xf32>
    %cst_20 = arith.constant dense<0.000000e+00> : vector<8xf32>
    %17 = vector.multi_reduction <add>, %16, %cst_20 [1] : vector<8x128xf32> to vector<8xf32>
    %18 = vector.shape_cast %17 : vector<8xf32> to vector<8x1xf32>
    %cst_21 = arith.constant 1.280000e+02 : f32
    %19 = vector.broadcast %cst_21 : f32 to vector<8x1xf32>
    %20 = arith.divf %18, %19 : vector<8x1xf32>
    %21 = vector.broadcast %20 : vector<8x1xf32> to vector<8x128xf32>
    %22 = arith.subf %16, %21 : vector<8x128xf32>
    %23 = arith.mulf %22, %22 : vector<8x128xf32>
    %cst_22 = arith.constant dense<0.000000e+00> : vector<8xf32>
    %24 = vector.multi_reduction <add>, %23, %cst_22 [1] : vector<8x128xf32> to vector<8xf32>
    %25 = vector.shape_cast %24 : vector<8xf32> to vector<8x1xf32>
    %cst_23 = arith.constant 1.280000e+02 : f32
    %26 = vector.broadcast %cst_23 : f32 to vector<8x1xf32>
    %27 = arith.divf %25, %26 : vector<8x1xf32>
    %28 = vector.broadcast %20 : vector<8x1xf32> to vector<8x128xf32>
    %29 = arith.subf %16, %28 : vector<8x128xf32>
    %cst_24 = arith.constant 9.99999997E-7 : f32
    %30 = vector.broadcast %cst_24 : f32 to vector<8x1xf32>
    %31 = arith.addf %27, %30 : vector<8x1xf32>
    %32 = math.rsqrt %31 : vector<8x1xf32>
    %33 = vector.broadcast %32 : vector<8x1xf32> to vector<8x128xf32>
    %34 = arith.mulf %29, %33 : vector<8x128xf32>
    %c0_25 = arith.constant 0 : index
    %c0_26 = arith.constant 0 : index
    %35 = vector.load %arg5[%c0_25, %c0_26] : memref<1x128xf32, #tpu.memory_space<vmem>>, vector<1x128xf32>
    %36 = vector.broadcast %35 : vector<1x128xf32> to vector<8x128xf32>
    %37 = arith.mulf %34, %36 : vector<8x128xf32>
    %c0_27 = arith.constant 0 : index
    %c0_28 = arith.constant 0 : index
    %38 = vector.load %arg6[%c0_27, %c0_28] : memref<1x128xf32, #tpu.memory_space<vmem>>, vector<1x128xf32>
    %39 = vector.broadcast %38 : vector<1x128xf32> to vector<8x128xf32>
    %40 = arith.addf %37, %39 : vector<8x128xf32>
    %c0_29 = arith.constant 0 : index
    %c0_30 = arith.constant 0 : index
    %41 = vector.load %arg1[%c0_29, %c0_30] : memref<4x8xbf16, #tpu.memory_space<vmem>>, vector<4x8xbf16>
    %42 = arith.truncf %40 : vector<8x128xf32> to vector<8x128xbf16>
    %cst_31 = arith.constant dense<0.000000e+00> : vector<4x128xf32>
    %43 = tpu.matmul %41, %42, %cst_31 {dimension_numbers = #tpu.dot_dimension_numbers<[1], [0], [0], [1], [0, 0, 1, 1], [], []>} : vector<4x8xbf16>, vector<8x128xbf16>, vector<4x128xf32> -> vector<4x128xf32>
    %44 = arith.truncf %43 : vector<4x128xf32> to vector<4x128xbf16>
    %c0_32 = arith.constant 0 : index
    %c0_33 = arith.constant 0 : index
    %45 = vector.load %arg7[%c0_32, %c0_33] : memref<128x256xbf16, #tpu.memory_space<vmem>>, vector<128x256xbf16>
    %cst_34 = arith.constant dense<0.000000e+00> : vector<4x256xf32>
    %46 = tpu.matmul %44, %45, %cst_34 {dimension_numbers = #tpu.dot_dimension_numbers<[1], [0], [0], [1], [0, 0, 1, 1], [], []>} : vector<4x128xbf16>, vector<128x256xbf16>, vector<4x256xf32> -> vector<4x256xf32>
    %c0_35 = arith.constant 0 : index
    %c0_36 = arith.constant 0 : index
    %47 = vector.load %arg8[%c0_35, %c0_36] : memref<1x256xf32, #tpu.memory_space<vmem>>, vector<1x256xf32>
    %48 = vector.broadcast %47 : vector<1x256xf32> to vector<4x256xf32>
    %49 = arith.addf %46, %48 : vector<4x256xf32>
    %c0_37 = arith.constant 0 : index
    %c0_38 = arith.constant 0 : index
    %50 = vector.load %arg9[%c0_37, %c0_38] : memref<4x256xf32, #tpu.memory_space<vmem>>, vector<4x256xf32>
    tpu.vector_store %arg9[%c0_37, %c0_38], %49 {strides = array<i32>} : memref<4x256xf32, #tpu.memory_space<vmem>>, vector<4x256xf32>,
    return
  }
}

module attributes {stable_mosaic.version = 11 : i64} {
  func.func @_text_loss_kernel(%arg0: memref<2x8xi32, #tpu.memory_space<smem>>, %arg1: memref<2x8xi32, #tpu.memory_space<smem>>, %arg2: memref<256x128xf32, #tpu.memory_space<vmem>>, %arg3: memref<128x128xbf16, #tpu.memory_space<vmem>>, %arg4: memref<1x128xf32, #tpu.memory_space<vmem>>, %arg5: memref<4x256xf32, #tpu.memory_space<vmem>>, %arg6: memref<1x1xf32, #tpu.memory_space<vmem>>, %arg7: memref<1x1xf32, #tpu.memory_space<vmem>>, %arg8: memref<1x1xf32, #tpu.memory_space<vmem>>, %arg9: memref<2x128xf32, #tpu.memory_space<vmem>>) attributes {dimension_semantics = [], scalar_prefetch = 0 : i64, scratch_operands = 1 : i64, tpu.core_type = #tpu.core_type<tc>} {
    %cst = arith.constant 0.000000e+00 : f32
    %0 = vector.broadcast %cst : f32 to vector<1x128xf32>
    %c0 = arith.constant 0 : index
    %c0_0 = arith.constant 0 : index
    %1 = memref.load %arg1[%c0, %c0_0] : memref<2x8xi32, #tpu.memory_space<smem>>
    %c0_1 = arith.constant 0 : index
    %c0_2 = arith.constant 0 : index
    %2 = memref.load %arg0[%c0_1, %c0_2] : memref<2x8xi32, #tpu.memory_space<smem>>
    %3 = arith.index_cast %2 : i32 to index
    %c0_3 = arith.constant 0 : index
    %4 = vector.load %arg2[%3, %c0_3] : memref<256x128xf32, #tpu.memory_space<vmem>>, vector<1x128xf32>
    %5 = arith.sitofp %1 : i32 to f32
    %6 = vector.broadcast %5 : f32 to vector<1x128xf32>
    %7 = arith.mulf %6, %4 : vector<1x128xf32>
    %8 = arith.addf %0, %7 : vector<1x128xf32>
    %c0_i32 = arith.constant 0 : i32
    %9 = arith.addi %c0_i32, %1 : i32
    %c0_4 = arith.constant 0 : index
    %c1 = arith.constant 1 : index
    %10 = memref.load %arg1[%c0_4, %c1] : memref<2x8xi32, #tpu.memory_space<smem>>
    %c0_5 = arith.constant 0 : index
    %c1_6 = arith.constant 1 : index
    %11 = memref.load %arg0[%c0_5, %c1_6] : memref<2x8xi32, #tpu.memory_space<smem>>
    %12 = arith.index_cast %11 : i32 to index
    %c0_7 = arith.constant 0 : index
    %13 = vector.load %arg2[%12, %c0_7] : memref<256x128xf32, #tpu.memory_space<vmem>>, vector<1x128xf32>
    %14 = arith.sitofp %10 : i32 to f32
    %15 = vector.broadcast %14 : f32 to vector<1x128xf32>
    %16 = arith.mulf %15, %13 : vector<1x128xf32>
    %17 = arith.addf %8, %16 : vector<1x128xf32>
    %18 = arith.addi %9, %10 : i32
    %c0_8 = arith.constant 0 : index
    %c2 = arith.constant 2 : index
    %19 = memref.load %arg1[%c0_8, %c2] : memref<2x8xi32, #tpu.memory_space<smem>>
    %c0_9 = arith.constant 0 : index
    %c2_10 = arith.constant 2 : index
    %20 = memref.load %arg0[%c0_9, %c2_10] : memref<2x8xi32, #tpu.memory_space<smem>>
    %21 = arith.index_cast %20 : i32 to index
    %c0_11 = arith.constant 0 : index
    %22 = vector.load %arg2[%21, %c0_11] : memref<256x128xf32, #tpu.memory_space<vmem>>, vector<1x128xf32>
    %23 = arith.sitofp %19 : i32 to f32
    %24 = vector.broadcast %23 : f32 to vector<1x128xf32>
    %25 = arith.mulf %24, %22 : vector<1x128xf32>
    %26 = arith.addf %17, %25 : vector<1x128xf32>
    %27 = arith.addi %18, %19 : i32
    %c0_12 = arith.constant 0 : index
    %c3 = arith.constant 3 : index
    %28 = memref.load %arg1[%c0_12, %c3] : memref<2x8xi32, #tpu.memory_space<smem>>
    %c0_13 = arith.constant 0 : index
    %c3_14 = arith.constant 3 : index
    %29 = memref.load %arg0[%c0_13, %c3_14] : memref<2x8xi32, #tpu.memory_space<smem>>
    %30 = arith.index_cast %29 : i32 to index
    %c0_15 = arith.constant 0 : index
    %31 = vector.load %arg2[%30, %c0_15] : memref<256x128xf32, #tpu.memory_space<vmem>>, vector<1x128xf32>
    %32 = arith.sitofp %28 : i32 to f32
    %33 = vector.broadcast %32 : f32 to vector<1x128xf32>
    %34 = arith.mulf %33, %31 : vector<1x128xf32>
    %35 = arith.addf %26, %34 : vector<1x128xf32>
    %36 = arith.addi %27, %28 : i32
    %c0_16 = arith.constant 0 : index
    %c4 = arith.constant 4 : index
    %37 = memref.load %arg1[%c0_16, %c4] : memref<2x8xi32, #tpu.memory_space<smem>>
    %c0_17 = arith.constant 0 : index
    %c4_18 = arith.constant 4 : index
    %38 = memref.load %arg0[%c0_17, %c4_18] : memref<2x8xi32, #tpu.memory_space<smem>>
    %39 = arith.index_cast %38 : i32 to index
    %c0_19 = arith.constant 0 : index
    %40 = vector.load %arg2[%39, %c0_19] : memref<256x128xf32, #tpu.memory_space<vmem>>, vector<1x128xf32>
    %41 = arith.sitofp %37 : i32 to f32
    %42 = vector.broadcast %41 : f32 to vector<1x128xf32>
    %43 = arith.mulf %42, %40 : vector<1x128xf32>
    %44 = arith.addf %35, %43 : vector<1x128xf32>
    %45 = arith.addi %36, %37 : i32
    %c0_20 = arith.constant 0 : index
    %c5 = arith.constant 5 : index
    %46 = memref.load %arg1[%c0_20, %c5] : memref<2x8xi32, #tpu.memory_space<smem>>
    %c0_21 = arith.constant 0 : index
    %c5_22 = arith.constant 5 : index
    %47 = memref.load %arg0[%c0_21, %c5_22] : memref<2x8xi32, #tpu.memory_space<smem>>
    %48 = arith.index_cast %47 : i32 to index
    %c0_23 = arith.constant 0 : index
    %49 = vector.load %arg2[%48, %c0_23] : memref<256x128xf32, #tpu.memory_space<vmem>>, vector<1x128xf32>
    %50 = arith.sitofp %46 : i32 to f32
    %51 = vector.broadcast %50 : f32 to vector<1x128xf32>
    %52 = arith.mulf %51, %49 : vector<1x128xf32>
    %53 = arith.addf %44, %52 : vector<1x128xf32>
    %54 = arith.addi %45, %46 : i32
    %c0_24 = arith.constant 0 : index
    %c6 = arith.constant 6 : index
    %55 = memref.load %arg1[%c0_24, %c6] : memref<2x8xi32, #tpu.memory_space<smem>>
    %c0_25 = arith.constant 0 : index
    %c6_26 = arith.constant 6 : index
    %56 = memref.load %arg0[%c0_25, %c6_26] : memref<2x8xi32, #tpu.memory_space<smem>>
    %57 = arith.index_cast %56 : i32 to index
    %c0_27 = arith.constant 0 : index
    %58 = vector.load %arg2[%57, %c0_27] : memref<256x128xf32, #tpu.memory_space<vmem>>, vector<1x128xf32>
    %59 = arith.sitofp %55 : i32 to f32
    %60 = vector.broadcast %59 : f32 to vector<1x128xf32>
    %61 = arith.mulf %60, %58 : vector<1x128xf32>
    %62 = arith.addf %53, %61 : vector<1x128xf32>
    %63 = arith.addi %54, %55 : i32
    %c0_28 = arith.constant 0 : index
    %c7 = arith.constant 7 : index
    %64 = memref.load %arg1[%c0_28, %c7] : memref<2x8xi32, #tpu.memory_space<smem>>
    %c0_29 = arith.constant 0 : index
    %c7_30 = arith.constant 7 : index
    %65 = memref.load %arg0[%c0_29, %c7_30] : memref<2x8xi32, #tpu.memory_space<smem>>
    %66 = arith.index_cast %65 : i32 to index
    %c0_31 = arith.constant 0 : index
    %67 = vector.load %arg2[%66, %c0_31] : memref<256x128xf32, #tpu.memory_space<vmem>>, vector<1x128xf32>
    %68 = arith.sitofp %64 : i32 to f32
    %69 = vector.broadcast %68 : f32 to vector<1x128xf32>
    %70 = arith.mulf %69, %67 : vector<1x128xf32>
    %71 = arith.addf %62, %70 : vector<1x128xf32>
    %72 = arith.addi %63, %64 : i32
    %73 = arith.sitofp %72 : i32 to f32
    %cst_32 = arith.constant 1.000000e+00 : f32
    %74 = arith.maximumf %73, %cst_32 : f32
    %75 = vector.broadcast %74 : f32 to vector<1x128xf32>
    %76 = arith.divf %71, %75 : vector<1x128xf32>
    %c0_33 = arith.constant 0 : index
    %c0_34 = arith.constant 0 : index
    %77 = vector.load %arg9[%c0_33, %c0_34] : memref<2x128xf32, #tpu.memory_space<vmem>>, vector<1x128xf32>
    tpu.vector_store %arg9[%c0_33, %c0_34], %76 {strides = array<i32>} : memref<2x128xf32, #tpu.memory_space<vmem>>, vector<1x128xf32>,
    %cst_35 = arith.constant 0.000000e+00 : f32
    %78 = vector.broadcast %cst_35 : f32 to vector<1x128xf32>
    %c1_36 = arith.constant 1 : index
    %c0_37 = arith.constant 0 : index
    %79 = memref.load %arg1[%c1_36, %c0_37] : memref<2x8xi32, #tpu.memory_space<smem>>
    %c1_38 = arith.constant 1 : index
    %c0_39 = arith.constant 0 : index
    %80 = memref.load %arg0[%c1_38, %c0_39] : memref<2x8xi32, #tpu.memory_space<smem>>
    %81 = arith.index_cast %80 : i32 to index
    %c0_40 = arith.constant 0 : index
    %82 = vector.load %arg2[%81, %c0_40] : memref<256x128xf32, #tpu.memory_space<vmem>>, vector<1x128xf32>
    %83 = arith.sitofp %79 : i32 to f32
    %84 = vector.broadcast %83 : f32 to vector<1x128xf32>
    %85 = arith.mulf %84, %82 : vector<1x128xf32>
    %86 = arith.addf %78, %85 : vector<1x128xf32>
    %c0_i32_41 = arith.constant 0 : i32
    %87 = arith.addi %c0_i32_41, %79 : i32
    %c1_42 = arith.constant 1 : index
    %c1_43 = arith.constant 1 : index
    %88 = memref.load %arg1[%c1_42, %c1_43] : memref<2x8xi32, #tpu.memory_space<smem>>
    %c1_44 = arith.constant 1 : index
    %c1_45 = arith.constant 1 : index
    %89 = memref.load %arg0[%c1_44, %c1_45] : memref<2x8xi32, #tpu.memory_space<smem>>
    %90 = arith.index_cast %89 : i32 to index
    %c0_46 = arith.constant 0 : index
    %91 = vector.load %arg2[%90, %c0_46] : memref<256x128xf32, #tpu.memory_space<vmem>>, vector<1x128xf32>
    %92 = arith.sitofp %88 : i32 to f32
    %93 = vector.broadcast %92 : f32 to vector<1x128xf32>
    %94 = arith.mulf %93, %91 : vector<1x128xf32>
    %95 = arith.addf %86, %94 : vector<1x128xf32>
    %96 = arith.addi %87, %88 : i32
    %c1_47 = arith.constant 1 : index
    %c2_48 = arith.constant 2 : index
    %97 = memref.load %arg1[%c1_47, %c2_48] : memref<2x8xi32, #tpu.memory_space<smem>>
    %c1_49 = arith.constant 1 : index
    %c2_50 = arith.constant 2 : index
    %98 = memref.load %arg0[%c1_49, %c2_50] : memref<2x8xi32, #tpu.memory_space<smem>>
    %99 = arith.index_cast %98 : i32 to index
    %c0_51 = arith.constant 0 : index
    %100 = vector.load %arg2[%99, %c0_51] : memref<256x128xf32, #tpu.memory_space<vmem>>, vector<1x128xf32>
    %101 = arith.sitofp %97 : i32 to f32
    %102 = vector.broadcast %101 : f32 to vector<1x128xf32>
    %103 = arith.mulf %102, %100 : vector<1x128xf32>
    %104 = arith.addf %95, %103 : vector<1x128xf32>
    %105 = arith.addi %96, %97 : i32
    %c1_52 = arith.constant 1 : index
    %c3_53 = arith.constant 3 : index
    %106 = memref.load %arg1[%c1_52, %c3_53] : memref<2x8xi32, #tpu.memory_space<smem>>
    %c1_54 = arith.constant 1 : index
    %c3_55 = arith.constant 3 : index
    %107 = memref.load %arg0[%c1_54, %c3_55] : memref<2x8xi32, #tpu.memory_space<smem>>
    %108 = arith.index_cast %107 : i32 to index
    %c0_56 = arith.constant 0 : index
    %109 = vector.load %arg2[%108, %c0_56] : memref<256x128xf32, #tpu.memory_space<vmem>>, vector<1x128xf32>
    %110 = arith.sitofp %106 : i32 to f32
    %111 = vector.broadcast %110 : f32 to vector<1x128xf32>
    %112 = arith.mulf %111, %109 : vector<1x128xf32>
    %113 = arith.addf %104, %112 : vector<1x128xf32>
    %114 = arith.addi %105, %106 : i32
    %c1_57 = arith.constant 1 : index
    %c4_58 = arith.constant 4 : index
    %115 = memref.load %arg1[%c1_57, %c4_58] : memref<2x8xi32, #tpu.memory_space<smem>>
    %c1_59 = arith.constant 1 : index
    %c4_60 = arith.constant 4 : index
    %116 = memref.load %arg0[%c1_59, %c4_60] : memref<2x8xi32, #tpu.memory_space<smem>>
    %117 = arith.index_cast %116 : i32 to index
    %c0_61 = arith.constant 0 : index
    %118 = vector.load %arg2[%117, %c0_61] : memref<256x128xf32, #tpu.memory_space<vmem>>, vector<1x128xf32>
    %119 = arith.sitofp %115 : i32 to f32
    %120 = vector.broadcast %119 : f32 to vector<1x128xf32>
    %121 = arith.mulf %120, %118 : vector<1x128xf32>
    %122 = arith.addf %113, %121 : vector<1x128xf32>
    %123 = arith.addi %114, %115 : i32
    %c1_62 = arith.constant 1 : index
    %c5_63 = arith.constant 5 : index
    %124 = memref.load %arg1[%c1_62, %c5_63] : memref<2x8xi32, #tpu.memory_space<smem>>
    %c1_64 = arith.constant 1 : index
    %c5_65 = arith.constant 5 : index
    %125 = memref.load %arg0[%c1_64, %c5_65] : memref<2x8xi32, #tpu.memory_space<smem>>
    %126 = arith.index_cast %125 : i32 to index
    %c0_66 = arith.constant 0 : index
    %127 = vector.load %arg2[%126, %c0_66] : memref<256x128xf32, #tpu.memory_space<vmem>>, vector<1x128xf32>
    %128 = arith.sitofp %124 : i32 to f32
    %129 = vector.broadcast %128 : f32 to vector<1x128xf32>
    %130 = arith.mulf %129, %127 : vector<1x128xf32>
    %131 = arith.addf %122, %130 : vector<1x128xf32>
    %132 = arith.addi %123, %124 : i32
    %c1_67 = arith.constant 1 : index
    %c6_68 = arith.constant 6 : index
    %133 = memref.load %arg1[%c1_67, %c6_68] : memref<2x8xi32, #tpu.memory_space<smem>>
    %c1_69 = arith.constant 1 : index
    %c6_70 = arith.constant 6 : index
    %134 = memref.load %arg0[%c1_69, %c6_70] : memref<2x8xi32, #tpu.memory_space<smem>>
    %135 = arith.index_cast %134 : i32 to index
    %c0_71 = arith.constant 0 : index
    %136 = vector.load %arg2[%135, %c0_71] : memref<256x128xf32, #tpu.memory_space<vmem>>, vector<1x128xf32>
    %137 = arith.sitofp %133 : i32 to f32
    %138 = vector.broadcast %137 : f32 to vector<1x128xf32>
    %139 = arith.mulf %138, %136 : vector<1x128xf32>
    %140 = arith.addf %131, %139 : vector<1x128xf32>
    %141 = arith.addi %132, %133 : i32
    %c1_72 = arith.constant 1 : index
    %c7_73 = arith.constant 7 : index
    %142 = memref.load %arg1[%c1_72, %c7_73] : memref<2x8xi32, #tpu.memory_space<smem>>
    %c1_74 = arith.constant 1 : index
    %c7_75 = arith.constant 7 : index
    %143 = memref.load %arg0[%c1_74, %c7_75] : memref<2x8xi32, #tpu.memory_space<smem>>
    %144 = arith.index_cast %143 : i32 to index
    %c0_76 = arith.constant 0 : index
    %145 = vector.load %arg2[%144, %c0_76] : memref<256x128xf32, #tpu.memory_space<vmem>>, vector<1x128xf32>
    %146 = arith.sitofp %142 : i32 to f32
    %147 = vector.broadcast %146 : f32 to vector<1x128xf32>
    %148 = arith.mulf %147, %145 : vector<1x128xf32>
    %149 = arith.addf %140, %148 : vector<1x128xf32>
    %150 = arith.addi %141, %142 : i32
    %151 = arith.sitofp %150 : i32 to f32
    %cst_77 = arith.constant 1.000000e+00 : f32
    %152 = arith.maximumf %151, %cst_77 : f32
    %153 = vector.broadcast %152 : f32 to vector<1x128xf32>
    %154 = arith.divf %149, %153 : vector<1x128xf32>
    %c1_78 = arith.constant 1 : index
    %c0_79 = arith.constant 0 : index
    %155 = vector.load %arg9[%c1_78, %c0_79] : memref<2x128xf32, #tpu.memory_space<vmem>>, vector<1x128xf32>
    tpu.vector_store %arg9[%c1_78, %c0_79], %154 {strides = array<i32>} : memref<2x128xf32, #tpu.memory_space<vmem>>, vector<1x128xf32>,
    %c0_80 = arith.constant 0 : index
    %c0_81 = arith.constant 0 : index
    %156 = vector.load %arg9[%c0_80, %c0_81] : memref<2x128xf32, #tpu.memory_space<vmem>>, vector<2x128xf32>
    %157 = arith.truncf %156 : vector<2x128xf32> to vector<2x128xbf16>
    %c0_82 = arith.constant 0 : index
    %c0_83 = arith.constant 0 : index
    %158 = vector.load %arg3[%c0_82, %c0_83] : memref<128x128xbf16, #tpu.memory_space<vmem>>, vector<128x128xbf16>
    %cst_84 = arith.constant dense<0.000000e+00> : vector<2x128xf32>
    %159 = tpu.matmul %157, %158, %cst_84 {dimension_numbers = #tpu.dot_dimension_numbers<[1], [0], [0], [1], [0, 0, 1, 1], [], []>} : vector<2x128xbf16>, vector<128x128xbf16>, vector<2x128xf32> -> vector<2x128xf32>
    %c0_85 = arith.constant 0 : index
    %c0_86 = arith.constant 0 : index
    %160 = vector.load %arg4[%c0_85, %c0_86] : memref<1x128xf32, #tpu.memory_space<vmem>>, vector<1x128xf32>
    %161 = vector.broadcast %160 : vector<1x128xf32> to vector<2x128xf32>
    %162 = arith.addf %159, %161 : vector<2x128xf32>
    %c2_87 = arith.constant 2 : index
    %c128 = arith.constant 128 : index
    %163 = vector.load %arg5[%c2_87, %c128] : memref<4x256xf32, #tpu.memory_space<vmem>>, vector<2x128xf32>
    %164 = arith.mulf %163, %163 : vector<2x128xf32>
    %cst_88 = arith.constant dense<0.000000e+00> : vector<2xf32>
    %165 = vector.multi_reduction <add>, %164, %cst_88 [1] : vector<2x128xf32> to vector<2xf32>
    %166 = vector.shape_cast %165 : vector<2xf32> to vector<2x1xf32>
    %cst_89 = arith.constant 9.99999996E-13 : f32
    %167 = vector.broadcast %cst_89 : f32 to vector<2x1xf32>
    %168 = arith.addf %166, %167 : vector<2x1xf32>
    %169 = math.rsqrt %168 : vector<2x1xf32>
    %170 = vector.broadcast %169 : vector<2x1xf32> to vector<2x128xf32>
    %171 = arith.mulf %163, %170 : vector<2x128xf32>
    %172 = arith.mulf %162, %162 : vector<2x128xf32>
    %cst_90 = arith.constant dense<0.000000e+00> : vector<2xf32>
    %173 = vector.multi_reduction <add>, %172, %cst_90 [1] : vector<2x128xf32> to vector<2xf32>
    %174 = vector.shape_cast %173 : vector<2xf32> to vector<2x1xf32>
    %cst_91 = arith.constant 9.99999996E-13 : f32
    %175 = vector.broadcast %cst_91 : f32 to vector<2x1xf32>
    %176 = arith.addf %174, %175 : vector<2x1xf32>
    %177 = math.rsqrt %176 : vector<2x1xf32>
    %178 = vector.broadcast %177 : vector<2x1xf32> to vector<2x128xf32>
    %179 = arith.mulf %162, %178 : vector<2x128xf32>
    %cst_92 = arith.constant dense<0.000000e+00> : vector<2x2xf32>
    %180 = tpu.matmul %171, %179, %cst_92 {dimension_numbers = #tpu.dot_dimension_numbers<[1], [1], [0], [0], [0, 0, 1, 0], [], []>} : vector<2x128xf32>, vector<2x128xf32>, vector<2x2xf32> -> vector<2x2xf32>
    %c0_93 = arith.constant 0 : index
    %c0_94 = arith.constant 0 : index
    %181 = vector.load %arg6[%c0_93, %c0_94] : memref<1x1xf32, #tpu.memory_space<vmem>>, vector<1x1xf32>
    %182 = math.exp %181 : vector<1x1xf32>
    %183 = vector.broadcast %182 : vector<1x1xf32> to vector<2x2xf32>
    %184 = arith.mulf %180, %183 : vector<2x2xf32>
    %c0_95 = arith.constant 0 : index
    %c0_96 = arith.constant 0 : index
    %185 = vector.load %arg7[%c0_95, %c0_96] : memref<1x1xf32, #tpu.memory_space<vmem>>, vector<1x1xf32>
    %186 = vector.broadcast %185 : vector<1x1xf32> to vector<2x2xf32>
    %187 = arith.addf %184, %186 : vector<2x2xf32>
    %188 = tpu.iota {dimensions = array<i32: 0>} : vector<2x2xi32>
    %189 = tpu.iota {dimensions = array<i32: 1>} : vector<2x2xi32>
    %190 = arith.cmpi eq, %188, %189 : vector<2x2xi32>
    %cst_97 = arith.constant 1.000000e+00 : f32
    %cst_98 = arith.constant -1.000000e+00 : f32
    %191 = vector.broadcast %cst_97 : f32 to vector<2x2xf32>
    %192 = vector.broadcast %cst_98 : f32 to vector<2x2xf32>
    %193 = arith.select %190, %191, %192 : vector<2x2xi1>, vector<2x2xf32>
    %cst_99 = arith.constant 0.000000e+00 : f32
    %194 = vector.broadcast %cst_99 : f32 to vector<2x2xf32>
    %195 = arith.subf %194, %193 : vector<2x2xf32>
    %196 = arith.mulf %195, %187 : vector<2x2xf32>
    %cst_100 = arith.constant 0.000000e+00 : f32
    %197 = vector.broadcast %cst_100 : f32 to vector<2x2xf32>
    %198 = arith.maximumf %197, %196 : vector<2x2xf32>
    %199 = vector.broadcast %cst_100 : f32 to vector<2x2xf32>
    %200 = arith.subf %199, %196 : vector<2x2xf32>
    %201 = arith.cmpf one, %200, %200 : vector<2x2xf32>
    %202 = vector.broadcast %cst_100 : f32 to vector<2x2xf32>
    %203 = arith.addf %202, %196 : vector<2x2xf32>
    %204 = math.absf %200 : vector<2x2xf32>
    %cst_101 = arith.constant 0.000000e+00 : f32
    %205 = vector.broadcast %cst_101 : f32 to vector<2x2xf32>
    %206 = arith.subf %205, %204 : vector<2x2xf32>
    %207 = math.exp %206 : vector<2x2xf32>
    %208 = math.log1p %207 : vector<2x2xf32>
    %209 = arith.addf %198, %208 : vector<2x2xf32>
    %210 = arith.select %201, %203, %209 : vector<2x2xi1>, vector<2x2xf32>
    %cst_102 = arith.constant dense<0.000000e+00> : vector<2xf32>
    %211 = vector.multi_reduction <add>, %210, %cst_102 [1] : vector<2x2xf32> to vector<2xf32>
    %212 = vector.shape_cast %211 : vector<2xf32> to vector<2x1xf32>
    %cst_103 = arith.constant dense<0.000000e+00> : vector<1xf32>
    %213 = vector.multi_reduction <add>, %212, %cst_103 [0] : vector<2x1xf32> to vector<1xf32>
    %214 = vector.shape_cast %213 : vector<1xf32> to vector<1x1xf32>
    %cst_104 = arith.constant 2.000000e+00 : f32
    %215 = vector.broadcast %cst_104 : f32 to vector<1x1xf32>
    %216 = arith.divf %214, %215 : vector<1x1xf32>
    %c0_105 = arith.constant 0 : index
    %c0_106 = arith.constant 0 : index
    %217 = vector.load %arg8[%c0_105, %c0_106] : memref<1x1xf32, #tpu.memory_space<vmem>>, vector<1x1xf32>
    tpu.vector_store %arg8[%c0_105, %c0_106], %216 {strides = array<i32>} : memref<1x1xf32, #tpu.memory_space<vmem>>, vector<1x1xf32>,
    return
  }
}

</mosaic_0001>

<bundles_post_ra>
// kernel: siglip_model_forward.3
= control target key start
LH: loop header
LB: loop body
LE: loop exit
PB: predicated region body
PF: predicated region fallthrough
CT: control target
= control target key end

     0   :  { %s930_s0 = inlined_call_operand.vmem [shape: s32[2,8], index: 0, kind: input, shape index: {}]   ;;  %s931_s1 = inlined_call_operand.vmem [shape: s32[2,8], index: 1, kind: input, shape index: {}]   ;;  %s932_s2 = inlined_call_operand.vmem [shape: f32[256,128], index: 2, kind: input, shape index: {}]   ;;  %s933_s3 = inlined_call_operand.vmem [shape: bf16[128,128], index: 3, kind: input, shape index: {}]   ;;  %s934_s4 = inlined_call_operand.vmem [shape: f32[1,128], index: 4, kind: input, shape index: {}]   ;;  %s935_s5 = inlined_call_operand.vmem [shape: f32[4,256], index: 5, kind: input, shape index: {}]   ;;  %s936_s6 = inlined_call_operand.<no memory space> [shape: f32[1,1], index: 6, kind: input, shape index: {}]   ;;  %s937_s8 = inlined_call_operand.hbm [shape: f32[1,1], index: 8, kind: output, shape index: {}]   ;;  %s938_s7 = inlined_call_operand.<no memory space> [shape: f32[1,1], index: 7, kind: input, shape index: {}]  }
   0x1   :  { %v13_v0 = vstv %s936_s6  ;;  %v15_v1 = vstv %s938_s7 }
   0x2   :  { %14 = vst [vmem:[#allocation3] sm:$0x1] %v13_v0  ;;  %16 = vst [vmem:[#allocation4] sm:$0x1] %v15_v1 }
   0x3   :  { %17 = vsyncpa [#allocation7], 0 }
   0x4   :  { %18 = vsyncpa [#allocation9], 0 }
   0x5   :  { %19 = vsyncpa [#allocation6], 0  ;;  %s26_s11 = sshll.u32 %s930_s0, 4  ;;  %s36_s14 = sshll.u32 %s931_s1, 4  ;;  %s27_s11 = int_to_ptr.vmem [resolvable:$true] %s26_s11  ;;  %s37_s14 = int_to_ptr.vmem [resolvable:$true] %s36_s14 }
   0x6   :  { %s623_s15 = scalar_lea.vmem %s27_s11, 32  ;;  %p628_p1 = scmp.lt.s32.totalorder %s27_s11, %s27_s11 }
   0x7   :  { %p624_p0 = scmp.ne.s32.totalorder %s27_s11, %s623_s15  ;;  %p629_p2 = scmp.lt.s32.totalorder %s623_s15, %s623_s15 }
   0x9   :  { %p630_p3 = por %p629_p2, %p628_p1 }
   0xb   :  { %p631_p4 = pnand %p630_p3, %p624_p0 }
   0xd   :  { %634 = shalt.err (!%p631_p4)
}
   0xe   :  { %s675_s6 = smov [#allocation5]   ;;  %s635_s7 = scalar_lea.vmem %s37_s14, 32 }
   0xf   :  { %29 = dma.vmem_to_smem %s27_s11, 32, %s675_s6, [#allocation7]  }
  0x10   :  { %p636_p5 = scmp.ne.s32.totalorder %s37_s14, %s635_s7  ;;  %p640_p6 = scmp.lt.s32.totalorder %s37_s14, %s37_s14 }
  0x11   :  { %p641_p7 = scmp.lt.s32.totalorder %s635_s7, %s635_s7 }
  0x13   :  { %p642_p8 = por %p641_p7, %p640_p6 }
  0x15   :  { %p643_p9 = pnand %p642_p8, %p636_p5 }
  0x17   :  { %646 = shalt.err (!%p643_p9)
}
  0x18   :  { %s676_s0 = smov [#allocation8]  }
  0x19   :  { %39 = dma.vmem_to_smem %s37_s14, 32, %s676_s0, [#allocation9]  }
  0x1a   :  { %669 = dma.done.wait [#allocation7], 32  }
  0x1b   :  { %670 = vsyncadd [#allocation7], 4294967264 }
  0x1c   :  { %671 = dma.done.wait [#allocation9], 32  }
  0x1d   :  { %672 = vsyncadd [#allocation9], 4294967264 }
  0x1e   :  { %58 = sfence }
  0x1f   :  { %v601_v2 = vld [vmem:[%s933_s3] sm:$0xff]   ;;  %v677_v3 = vmov 0.0   ;;  %v602_v4 = vld [vmem:[%s933_s3 + $0x8] sm:$0xff]   ;;  %vm678_vm0 = vmmov 0   ;;  %v603_v5 = vld [vmem:[%s933_s3 + $0x10] sm:$0xff]   ;;  %s755_s21 = sld [smem:[#allocation8]] }
  0x20   :  { %566 = vmatprep.subr.bf16.mxu0 %v677_v3  ;;  %586 = vmatprep.subr.mxu1 %v677_v3  ;;  %s61_s22 = sld [smem:[#allocation5]]  ;;  %s757_s23 = sld [smem:[#allocation8 + $0x1]]  ;;  %v604_v6 = vld [vmem:[%s933_s3 + $0x18] sm:$0xff]   ;;  %v605_v7 = vld [vmem:[%s933_s3 + $0x20] sm:$0xff]   ;;  %v606_v14 = vld [vmem:[%s933_s3 + $0x28] sm:$0xff]   ;;  %vm337_vm1 = vcmask 1041408  }
  0x21   :  { %567 = vmatpush3.bf16.msra.mxu0 %v601_v2  ;;  %582 = vmatprep.mubr.msk.bf16.mxu0 %vm678_vm0, %v677_v3  ;;  %s516_s24 = sld [smem:[#allocation5 + $0x1]]  ;;  %s762_s27 = sld [smem:[#allocation8 + $0x2]]  ;;  %v607_v21 = vld [vmem:[%s933_s3 + $0x30] sm:$0xff]   ;;  %v608_v26 = vld [vmem:[%s933_s3 + $0x38] sm:$0xff]   ;;  %vm329_vm2 = vcmask 1043458   ;;  %vm468_vm5 = vcmask 9216  }
  0x22   :  { %568 = vmatprep.subr.bf16.mxu0 %v677_v3  ;;  %588 = vmatprep.mubr.msk.f32.mxu1 %vm678_vm0, %v677_v3  ;;  %s518_s28 = sld [smem:[#allocation5 + $0x2]]  ;;  %s765_s29 = sld [smem:[#allocation8 + $0x3]]  ;;  %vm481_vm7 = vcmask 0  }
  0x23   :  { %s767_s30 = sld [smem:[#allocation5 + $0x3]]  ;;  %s769_s9 = sld [smem:[#allocation8 + $0x4]] }
  0x24   :  { %s771_s10 = sld [smem:[#allocation5 + $0x4]]  ;;  %s773_s11 = sld [smem:[#allocation8 + $0x5]] }
  0x25   :  { %569 = vmatpush3.bf16.msra.mxu0 %v602_v4  ;;  %s775_s12 = sld [smem:[#allocation5 + $0x5]]  ;;  %s64_s0 = scvt.s32.f32 %s755_s21 }
  0x26   :  { %570 = vmatprep.subr.bf16.mxu0 %v677_v3  ;;  %s62_s7 = scalar_lea.vmem %s932_s2, %s61_s22  ;;  %s72_s18 = scvt.s32.f32 %s757_s23 }
  0x27   :  { %v63_v8 = vld [vmem:[%s62_s7] sm:$0x1]  ;;  %s70_s17 = scalar_lea.vmem %s932_s2, %s516_s24  ;;  %v65_v9 = vstv %s64_s0  ;;  %s76_s19 = sadd.s32 %s757_s23, %s755_s21 }
  0x28   :  { %v71_v10 = vld [vmem:[%s70_s17] sm:$0x1]  ;;  %s79_s22 = scalar_lea.vmem %s932_s2, %s518_s28  ;;  %v66_v11 = vmul.f32 %v65_v9, %v63_v8  ;;  %v73_v12 = vstv %s72_s18  ;;  %s81_s26 = scvt.s32.f32 %s762_s27 }
  0x29   :  { %571 = vmatpush3.bf16.msra.mxu0 %v603_v5  ;;  %v80_v13 = vld [vmem:[%s79_s22] sm:$0x1]  ;;  %s85_s13 = sadd.s32 %s762_s27, %s76_s19  ;;  %v74_v15 = vmul.f32 %v73_v12, %v71_v10  ;;  %s88_s15 = scalar_lea.vmem %s932_s2, %s767_s30 }
  0x2a   :  { %572 = vmatprep.subr.bf16.mxu0 %v677_v3  ;;  %s90_s28 = scvt.s32.f32 %s765_s29  ;;  %v82_v16 = vstv %s81_s26  ;;  %v89_v17 = vld [vmem:[%s88_s15] sm:$0x1]  ;;  %s94_s6 = sadd.s32 %s765_s29, %s85_s13 }
  0x2b   :  { %s97_s0 = scalar_lea.vmem %s932_s2, %s771_s10  ;;  %v75_v18 = vadd.f32 %v74_v15, %v66_v11  ;;  %v83_v19 = vmul.f32 %v82_v16, %v80_v13  ;;  %s99_s1 = scvt.s32.f32 %s769_s9 }
  0x2c   :  { %v91_v20 = vstv %s90_s28  ;;  %s812_s16 = sadd.s32 %s769_s9, %s94_s6  ;;  %s106_s30 = scalar_lea.vmem %s932_s2, %s775_s12  ;;  %v98_v24 = vld [vmem:[%s97_s0] sm:$0x1] }
  0x2d   :  { %573 = vmatpush3.bf16.msra.mxu0 %v604_v6  ;;  %s108_s19 = scvt.s32.f32 %s773_s11  ;;  %v84_v22 = vadd.f32 %v83_v19, %v75_v18  ;;  %v92_v23 = vmul.f32 %v91_v20, %v89_v17  ;;  %s112_s29 = sadd.s32 %s773_s11, %s812_s16  ;;  %v100_v25 = vstv %s99_s1  ;;  %v107_v29 = vld [vmem:[%s106_s30] sm:$0x1]  ;;  %v327_v19 = vld [vmem:[%s935_s5 + $0x4] sm:$0xc] }
  0x2e   :  { %574 = vmatprep.subr.bf16.mxu0 %v677_v3  ;;  %s824_s10 = sld [smem:[#allocation8 + $0x6]]  ;;  %s827_s22 = sld [smem:[#allocation8 + $0x7]]  ;;  %v101_v28 = vmul.f32 %v100_v25, %v98_v24  ;;  %v545_v17 = vld [vmem:[%s934_s4] ss:$0 sm:$0xff]  ;;  %v328_v25 = vmul.f32 %v327_v19, %v327_v19 }
  0x2f   :  { %s526_s9 = sld [smem:[#allocation5 + $0x6]]  ;;  %s829_s12 = sld [smem:[#allocation5 + $0x7]]  ;;  %v93_v27 = vadd.f32 %v92_v23, %v84_v22  ;;  %v109_v30 = vstv %s108_s19 }
  0x30   :  { %s831_s26 = sld [smem:[#allocation8 + $0x80]]  ;;  %s833_s24 = sld [smem:[#allocation8 + $0x81]]  ;;  %v110_v32 = vmul.f32 %v109_v30, %v107_v29  ;;  %v421_v29 = vlaneseq  ;;  %v680_v30 = vmov 0  }
  0x31   :  { %575 = vmatpush3.bf16.msra.mxu0 %v605_v7  ;;  %s530_s13 = sld [smem:[#allocation5 + $0x80]]  ;;  %s532_s21 = sld [smem:[#allocation5 + $0x81]]  ;;  %v102_v31 = vadd.f32 %v101_v28, %v93_v27  ;;  %v330_v27 = vsel %vm329_vm2, %v328_v25, 0.0  ;;  %v417_v28 = vld [vmem:[#allocation3] sm:$0x1]  ;;  %599 = vset.pattern.permute.xlu1 %v680_v30 }
  0x32   :  { %576 = vmatprep.subr.bf16.mxu0 %v677_v3  ;;  %s838_s23 = sld [smem:[#allocation8 + $0x82]]  ;;  %s843_s28 = sld [smem:[#allocation8 + $0x83]]  ;;  %600 = vset.pattern.permute.xlu0 %v680_v30 }
  0x33   :  { %s841_s15 = sld [smem:[#allocation5 + $0x82]]  ;;  %s679_s7 = smov 1.0   ;;  %v111_v37 = vadd.f32 %v110_v32, %v102_v31  ;;  %v418_v31 = vmul.f32 1.442695, %v417_v28  ;;  %v422_v32 = vshrl.u32 %v421_v29, 7 }
  0x34   :  { %s117_s6 = scvt.s32.f32 %s824_s10  ;;  %s121_s27 = sadd.s32 %s824_s10, %s112_s29 }
  0x35   :  { %577 = vmatpush3.bf16.msra.mxu0 %v606_v14  ;;  %s115_s0 = scalar_lea.vmem %s932_s2, %s526_s9  ;;  %s126_s1 = scvt.s32.f32 %s827_s22 }
  0x36   :  { %578 = vmatprep.subr.bf16.mxu0 %v677_v3  ;;  %s124_s18 = scalar_lea.vmem %s932_s2, %s829_s12  ;;  %s130_s30 = sadd.s32 %s827_s22, %s121_s27  ;;  %v116_v33 = vld [vmem:[%s115_s0] sm:$0x1]  ;;  %v118_v34 = vstv %s117_s6 }
  0x37   :  { %s131_s19 = scvt.s32.f32 %s130_s30  ;;  %s139_s29 = scalar_lea.vmem %s932_s2, %s530_s13  ;;  %v119_v38 = vmul.f32 %v118_v34, %v116_v33  ;;  %v125_v41 = vld [vmem:[%s124_s18] sm:$0x1]  ;;  %v127_v42 = vstv %s126_s1  ;;  %v444_v33 = vand.u32 127, %v421_v29  ;;  %v423_v34 = vsub.s32 0, %v422_v32 }
  0x38   :  { %v140_v35 = vld [vmem:[%s139_s29] sm:$0x1]  ;;  %s141_s10 = scvt.s32.f32 %s831_s26  ;;  %s147_s14 = scalar_lea.vmem %s932_s2, %s532_s21  ;;  %v128_v49 = vmul.f32 %v127_v42, %v125_v41 }
  0x39   :  { %579 = vmatpush3.bf16.msra.mxu0 %v607_v21  ;;  %s132_s22 = smax.f32 %s679_s7, %s131_s19  ;;  %v148_v36 = vld [vmem:[%s147_s14] sm:$0x1]  ;;  %s149_s12 = scvt.s32.f32 %s833_s24  ;;  %v120_v48 = vadd.f32 %v119_v38, %v111_v37  ;;  %vm445_vm3 = vcmp.eq.s32.totalorder %v422_v32, %v444_v33  ;;  %v554_v37 = vld [vmem:[#allocation4] ss:$0 sm:$0xff] }
  0x3a   :  { %580 = vmatprep.subr.bf16.mxu0 %v677_v3  ;;  %v133_v39 = vstv %s132_s22  ;;  %v142_v40 = vstv %s141_s10  ;;  %s153_s13 = sadd.s32 %s833_s24, %s831_s26  ;;  %s156_s3 = scalar_lea.vmem %s932_s2, %s841_s15 }
  0x3b   :  { %609 = vrcp.f32 %v133_v39  ;;  %v143_v43 = vmul.f32 %v142_v40, %v140_v35  ;;  %v150_v44 = vstv %s149_s12  ;;  %v157_v45 = vld [vmem:[%s156_s3] sm:$0x1]  ;;  %s158_s21 = scvt.s32.f32 %s838_s23  ;;  %s162_s0 = sadd.s32 %s838_s23, %s153_s13  ;;  %v129_v53 = vadd.f32 %v128_v49, %v120_v48 }
  0x3c   :  { %v151_v46 = vmul.f32 %v150_v44, %v148_v36  ;;  %s536_s16 = sld [smem:[#allocation5 + $0x83]]  ;;  %s167_s17 = scvt.s32.f32 %s843_s28  ;;  %v681_v48 = vmov -1.0  }
  0x3d   :  { %581 = vmatpush3.bf16.msra.mxu0 %v608_v26  ;;  %v159_v47 = vstv %s158_s21  ;;  %s171_s30 = sadd.s32 %s843_s28, %s162_s0  ;;  %s537_s19 = sld [smem:[#allocation8 + $0x84]]  ;;  %v446_v49 = vsel %vm445_vm3, 1.0, %v681_v48 }
  0x3e   :  { %v152_v50 = vadd.f32 %v151_v46, %v143_v43  ;;  %v160_v51 = vmul.f32 %v159_v47, %v157_v45  ;;  %s538_s26 = sld [smem:[#allocation5 + $0x84]]  ;;  %s875_s24 = sld [smem:[#allocation8 + $0x85]]  ;;  %v168_v52 = vstv %s167_s17 }
  0x3f   :  { %s540_s15 = sld [smem:[#allocation5 + $0x85]]  ;;  %s877_s1 = sld [smem:[#allocation8 + $0x86]] }
  0x40   :  { %s879_s18 = sld [smem:[#allocation5 + $0x86]]  ;;  %s881_s23 = sld [smem:[#allocation8 + $0x87]]  ;;  %v161_v54 = vadd.f32 %v160_v51, %v152_v50 }
  0x41   :  { %s886_s29 = sld [smem:[#allocation5 + $0x87]]  ;;  %s682_s4 = smov [#allocation10]  }
  0x42   :  { %s165_s25 = scalar_lea.vmem %s932_s2, %s536_s16  ;;  %s489_s5 = sshll.u32 %s682_s4, 4  ;;  %s490_s5 = int_to_ptr.vmem [resolvable:$true] %s489_s5 }
  0x43   :  { %v166_v55 = vld [vmem:[%s165_s25] sm:$0x1]  ;;  %s176_s10 = scvt.s32.f32 %s537_s19  ;;  %s180_s9 = sadd.s32 %s537_s19, %s171_s30 }
  0x44   :  { %v169_v56 = vmul.f32 %v168_v52, %v166_v55  ;;  %s174_s22 = scalar_lea.vmem %s932_s2, %s538_s26  ;;  %s185_s12 = scvt.s32.f32 %s875_s24  ;;  %v447_v52 = vsub.f32 0.0, %v446_v49 }
  0x45   :  { %v610_v57 = vpop.eup %609  ;;  %v175_v58 = vld [vmem:[%s174_s22] sm:$0x1]  ;;  %v177_v59 = vstv %s176_s10  ;;  %s183_s27 = scalar_lea.vmem %s932_s2, %s540_s15  ;;  %s189_s3 = sadd.s32 %s875_s24, %s180_s9 }
  0x46   :  { %v135_v60 = vmul.f32 %v610_v57, %v129_v53  ;;  %v170_v61 = vadd.f32 %v169_v56, %v161_v54  ;;  %v178_v62 = vmul.f32 %v177_v59, %v175_v58  ;;  %v184_v63 = vld [vmem:[%s183_s27] sm:$0x1]  ;;  %v186_v0 = vstv %s185_s12  ;;  %s192_s16 = scalar_lea.vmem %s932_s2, %s879_s18  ;;  %s194_s17 = scvt.s32.f32 %s877_s1 }
  0x47   :  { %s198_s30 = sadd.s32 %s877_s1, %s189_s3  ;;  %v187_v2 = vmul.f32 %v186_v0, %v184_v63  ;;  %v193_v3 = vld [vmem:[%s192_s16] sm:$0x1]  ;;  %s203_s26 = scvt.s32.f32 %s881_s23 }
  0x48   :  { %136 = vst [vmem:[#allocation2] sm:$0x1] %v135_v60  ;;  %v179_v1 = vadd.f32 %v178_v62, %v170_v61  ;;  %s207_s19 = sadd.s32 %s881_s23, %s198_s30  ;;  %v195_v4 = vstv %s194_s17  ;;  %s201_s20 = scalar_lea.vmem %s932_s2, %s886_s29 }
  0x49   :  { %s208_s24 = scvt.s32.f32 %s207_s19  ;;  %v196_v6 = vmul.f32 %v195_v4, %v193_v3  ;;  %v202_v8 = vld [vmem:[%s201_s20] sm:$0x1]  ;;  %v204_v9 = vstv %s203_s26  ;;  %s647_s23 = scalar_lea.vmem %s490_s5, 16 }
  0x4a   :  { %v188_v5 = vadd.f32 %v187_v2, %v179_v1  ;;  %v205_v11 = vmul.f32 %v204_v9, %v202_v8  ;;  %p648_p10 = scmp.ne.s32.totalorder %s490_s5, %s647_s23  ;;  %s651_s29 = scalar_lea.vmem %s490_s5, 32 }
  0x4b   :  { %s209_s25 = smax.f32 %s679_s7, %s208_s24  ;;  %p652_p11 = scmp.lt.s32.totalorder %s490_s5, %s490_s5 }
  0x4c   :  { %v210_v7 = vstv %s209_s25  ;;  %v197_v10 = vadd.f32 %v196_v6, %v188_v5  ;;  %p653_p12 = scmp.lt.s32.totalorder %s651_s29, %s647_s23 }
  0x4d   :  { %611 = vrcp.f32 %v210_v7 }
  0x4e   :  { %v206_v12 = vadd.f32 %v205_v11, %v197_v10  ;;  %613 = vpow2.f32 %v418_v31  ;;  %p654_p13 = por %p653_p12, %p652_p11 }
  0x50   :  { %p655_p0 = pnand %p654_p13, %p648_p10 }
  0x57   :  { %v612_v13 = vpop.eup %611 }
  0x58   :  { %v212_v14 = vmul.f32 %v612_v13, %v206_v12  ;;  %v614_v35 = vpop.eup %613 }
  0x59   :  { %v424_v36 = vrot.slane %v614_v35, %v423_v34 }
  0x5a   :  { %213 = vst [vmem:[#allocation2 + $0x1] sm:$0x1] %v212_v14 }
  0x5b   :  { %426 = vperm.xlu1 %599, %v424_v36  }
  0x5f   :  { %437 = vperm.xlu1 %599, %v554_v37  }
  0x61   :  { %v214_v15 = vld [vmem:[#allocation2] sm:$0x3] }
  0x62   :  { %v215_v16 = vpack.c.bf16 %v214_v15, %v214_v15 }
  0x64   :  { %583 = vmatmul.mubr.bf16.vlgmr.msra.gmra.mrb[0].mxu0 %v215_v16 }
  0xda   :  { %v427_v47 = vpop.permute.xlu1 %426 }
  0xde   :  { %v438_v54 = vpop.permute.xlu1 %437 }
 0x137   :  { %v321_v18 = vpop.f32.mrb[0].mxu0 }
 0x138   :  { %v322_v20 = vadd.f32 %v545_v17, %v321_v18  ;;  %v584_v21 = vpop.f32.mrb[1].mxu0 }
 0x139   :  { %v324_v22 = vpop.f32.mrb[2].mxu0 }
 0x13a   :  { %v585_v23 = vpop.f32.mrb[3].mxu0  ;;  %v336_v24 = vmul.f32 %v322_v20, %v322_v20 }
 0x13c   :  { %v338_v26 = vsel %vm337_vm1, %v336_v24, 0.0 }
 0x13d   :  { %339 = vadd.xlane.f32.xlu0 %v338_v26 }
 0x141   :  { %331 = vadd.xlane.f32.xlu0 %v330_v27 }
 0x1ca   :  { %v340_v38 = vpop.xlane.xlu0 %339 }
 0x1cb   :  { %v341_v39 = vadd.f32 1e-12, %v340_v38 }
 0x1cd   :  { %615 = vrsqrt.f32 %v341_v39 }
 0x1ce   :  { %v332_v40 = vpop.xlane.xlu0 %331 }
 0x1cf   :  { %v333_v41 = vadd.f32 1e-12, %v332_v40 }
 0x1d1   :  { %617 = vrsqrt.f32 %v333_v41 }
 0x1d7   :  { %v616_v42 = vpop.eup %615 }
 0x1d8   :  { %v343_v43 = vmul.f32 %v616_v42, %v322_v20 }
 0x1da   :  { %587 = vmatpush3.xpose.msra.mxu1 %v343_v43 }
 0x1db   :  { %v618_v44 = vpop.eup %617 }
 0x1dc   :  { %v335_v45 = vmul.f32 %v618_v44, %v327_v19 }
 0x1de   :  { %v345_v46 = vrot.slane %v335_v45, 2 }
 0x1e0   :  { %589 = vmatmul.mubr.f32.vlgmr.msra.gmra.mrb[0].mxu1 %v345_v46 }
 0x2b3   :  { %v413_v50 = vpop.f32.mrb[0].mxu1 }
 0x2b4   :  { %v429_v51 = vmul.f32 %v427_v47, %v413_v50  ;;  %v590_v53 = vpop.f32.mrb[1].mxu1 }
 0x2b6   :  { %v440_v55 = vadd.f32 %v438_v54, %v429_v51 }
 0x2b8   :  { %v448_v56 = vmul.f32 %v447_v52, %v440_v55 }
 0x2ba   :  { %v450_v57 = vsub.f32 0.0, %v448_v56  ;;  %v449_v5 = vmax.f32 %v448_v56, 0.0 }
 0x2bc   :  { %v453_v58 = vand.u32 2147483647, %v450_v57  ;;  %vm451_vm6 = vcmp.ne.f32.partialorder %v450_v57, %v450_v57 }
 0x2be   :  { %v454_v59 = vsub.f32 0.0, %v453_v58 }
 0x2c0   :  { %v455_v60 = vmul.f32 1.442695, %v454_v59 }
 0x2c2   :  { %619 = vpow2.f32 %v455_v60 }
 0x2cc   :  { %v620_v61 = vpop.eup %619 }
 0x2cd   :  { %v457_v62 = vadd.f32 1.0, %v620_v61  ;;  %v460_v63 = vmul.f32 -0.5, %v620_v61  ;;  %v463_v1 = vand.u32 2147483647, %v620_v61 }
 0x2cf   :  { %621 = vlog2.f32 %v457_v62  ;;  %v461_v0 = vadd.f32 1.0, %v460_v63  ;;  %vm464_vm4 = vcmp.lt.f32.partialorder %v463_v1, 0.0004427343 }
 0x2d1   :  { %v462_v4 = vmul.f32 %v620_v61, %v461_v0 }
 0x2d9   :  { %v622_v2 = vpop.eup %621 }
 0x2da   :  { %v459_v3 = vmul.f32 0.6931472, %v622_v2 }
 0x2dc   :  { %v465_v6 = vsel %vm464_vm4, %v462_v4, %v459_v3 }
 0x2dd   :  { %v466_v7 = vadd.f32 %v465_v6, %v449_v5 }
 0x2df   :  { %v467_v8 = vsel %vm451_vm6, %v448_v56, %v466_v7 }
 0x2e0   :  { %v469_v9 = vsel %vm468_vm5, %v467_v8, 0.0 }
 0x2e1   :  { %470 = vadd.xlane.f32.xlu0 %v469_v9 }
 0x36e   :  { %v471_v10 = vpop.xlane.xlu0 %470 }
 0x36f   :  { %v472_v11 = vsel %vm337_vm1, %v471_v10, 0.0 }
 0x370   :  { %v473_v12 = vrot.slane %v472_v11, 4 }
 0x372   :  { %v474_v13 = vadd.f32 %v473_v12, %v472_v11 }
 0x374   :  { %v475_v14 = vrot.slane %v474_v13, 2 }
 0x376   :  { %v476_v15 = vadd.f32 %v475_v14, %v474_v13 }
 0x378   :  { %v477_v16 = vrot.slane %v476_v15, 1 }
 0x37a   :  { %v478_v17 = vadd.f32 %v477_v16, %v476_v15 }
 0x37c   :  { %v480_v18 = vmul.f32 0.5, %v478_v17 }
 0x37e   :  { %482 = vst.msk [vmem:[#allocation10] sm:$0x1] %vm481_vm7, %v480_v18 }
 0x37f   :  { %658 = shalt.err (!%p655_p0)
}
 0x380   :  { %s659_s11 = scalar_lea.hbm %s937_s8, 16 }
 0x381   :  { %p660_p1 = scmp.ne.s32.totalorder %s937_s8, %s659_s11  ;;  %p663_p2 = scmp.lt.u32.totalorder %s659_s11, %s937_s8 }
 0x383   :  { %p665_p3 = pnand %p663_p2, %p660_p1 }
 0x385   :  { %668 = shalt.err (!%p665_p3)
}
 0x386   :  { %492 = dma.vmem_to_hbm [thread:$0]  %s490_s5, 16, %s937_s8, [#allocation6]  }
 0x387   :  { %673 = dma.done.wait [#allocation6], 16  }
 0x388   :  { %674 = vsyncadd [#allocation6], 4294967280 }
 0x389   :  { %496 = vsyncpa [#allocation6], 1 }
 0x38a   :  { %497 = vsyncpa [#allocation7], 1 }
 0x38b   :  { %498 = vsyncpa [#allocation9], 1 }

// kernel: siglip_model_forward.2
= control target key start
LH: loop header
LB: loop body
LE: loop exit
PB: predicated region body
PF: predicated region fallthrough
CT: control target
= control target key end

     0   :  { %v513_v0 = vmov 0   ;;  %vm140_vm0 = vcmask 523264   ;;  %v514_v34 = vmov 0.0   ;;  %vm515_vm1 = vmmov 0   ;;  %s693_s2 = inlined_call_operand.vmem [shape: bf16[192,128], index: 2, kind: input, shape index: {}]   ;;  %s694_s0 = inlined_call_operand.vmem [shape: f32[8,192], index: 0, kind: input, shape index: {}]   ;;  %s695_s3 = inlined_call_operand.vmem [shape: f32[1,128], index: 3, kind: input, shape index: {}]   ;;  %s696_s4 = inlined_call_operand.vmem [shape: f32[4,128], index: 4, kind: input, shape index: {}]   ;;  %s697_s7 = inlined_call_operand.vmem [shape: bf16[128,256], index: 7, kind: input, shape index: {}]   ;;  %s698_s5 = inlined_call_operand.vmem [shape: f32[1,128], index: 5, kind: input, shape index: {}]   ;;  %s699_s6 = inlined_call_operand.vmem [shape: f32[1,128], index: 6, kind: input, shape index: {}]   ;;  %s700_s1 = inlined_call_operand.vmem [shape: bf16[4,8], index: 1, kind: input, shape index: {}]   ;;  %s701_s8 = inlined_call_operand.vmem [shape: f32[1,256], index: 8, kind: input, shape index: {}]   ;;  %s702_s9 = inlined_call_operand.vmem [shape: f32[4,256], index: 9, kind: output, shape index: {}]  }
   0x1   :  { %144 = vmatprep.subr.bf16.mxu0 %v513_v0  ;;  %v475_v1 = vld [vmem:[%s693_s2] sm:$0xff]   ;;  %v476_v2 = vld [vmem:[%s693_s2 + $0x8] sm:$0xff]   ;;  %v477_v3 = vld [vmem:[%s693_s2 + $0x10] sm:$0xff]   ;;  %466 = vmatprep.subr.bf16.mxu1 %v514_v34  ;;  %vm228_vm2 = vcmask 1043456   ;;  %vm224_vm3 = vcmask 64512  }
   0x2   :  { %145 = vmatpush1.bf16.msra.mxu0 %v475_v1  ;;  %v478_v4 = vld [vmem:[%s693_s2 + $0x18] sm:$0xff]   ;;  %v34_v5 = vld [vmem:[%s694_s0 + $0x8] sm:$0xff]  ;;  %v479_v7 = vld [vmem:[%s693_s2 + $0x20] sm:$0xff]   ;;  %468 = vmatprep.mubr.msk.bf16.mxu1 %vm515_vm1, %v514_v34 }
   0x3   :  { %146 = vmatprep.subr.bf16.mxu0 %v513_v0  ;;  %v36_v6 = vpack.c.bf16 %v34_v5, %v34_v5  ;;  %v480_v8 = vld [vmem:[%s693_s2 + $0x28] sm:$0xff]   ;;  %v481_v9 = vld [vmem:[%s693_s2 + $0x30] sm:$0xff]   ;;  %v482_v10 = vld [vmem:[%s693_s2 + $0x38] sm:$0xff]  }
   0x4   :  { %v483_v11 = vld [vmem:[%s693_s2 + $0x40] sm:$0xff]   ;;  %v484_v12 = vld [vmem:[%s693_s2 + $0x48] sm:$0xff]   ;;  %v485_v13 = vld [vmem:[%s693_s2 + $0x50] sm:$0xff]  }
   0x5   :  { %444 = vmatprep.mubr.msk.bf16.mxu0 %vm140_vm0, %v36_v6  ;;  %v486_v14 = vld [vmem:[%s693_s2 + $0x58] sm:$0xff]   ;;  %v33_v15 = vld [vmem:[%s694_s0] sm:$0xff] }
   0x6   :  { %147 = vmatpush1.bf16.msra.mxu0 %v476_v2  ;;  %v35_v16 = vpack.c.bf16 %v33_v15, %v33_v15  ;;  %v431_v17 = vld [vmem:[%s695_s3] ss:$0 sm:$0xff]  ;;  %v489_v45 = vld [vmem:[%s697_s7 + $0x4] ss:$8 sps:$4 sm:$0xff]   ;;  %v492_v49 = vld [vmem:[%s697_s7 + $0x14] ss:$8 sps:$4 sm:$0xff]  }
   0x7   :  { %148 = vmatprep.subr.bf16.mxu0 %v513_v0  ;;  %v186_v23 = vld [vmem:[%s696_s4] sm:$0xf]  ;;  %v490_v50 = vld [vmem:[%s697_s7 + $0x10] ss:$8 sps:$4 sm:$0xff]   ;;  %v495_v51 = vld [vmem:[%s697_s7 + $0x24] ss:$8 sps:$4 sm:$0xff]  }
   0x8   :  { %v190_v24 = vld [vmem:[%s696_s4] sm:$0xf]  ;;  %v498_v53 = vld [vmem:[%s697_s7 + $0x34] ss:$8 sps:$4 sm:$0xff]   ;;  %v496_v54 = vld [vmem:[%s697_s7 + $0x30] ss:$8 sps:$4 sm:$0xff]  }
   0x9   :  { %v445_v39 = vld [vmem:[%s698_s5] ss:$0 sm:$0xff]  ;;  %v501_v55 = vld [vmem:[%s697_s7 + $0x44] ss:$8 sps:$4 sm:$0xff]   ;;  %v504_v57 = vld [vmem:[%s697_s7 + $0x54] ss:$8 sps:$4 sm:$0xff]  }
   0xa   :  { %149 = vmatpush1.bf16.msra.mxu0 %v477_v3  ;;  %v446_v41 = vld [vmem:[%s699_s6] ss:$0 sm:$0xff]  ;;  %v502_v58 = vld [vmem:[%s697_s7 + $0x50] ss:$8 sps:$4 sm:$0xff]   ;;  %v507_v59 = vld [vmem:[%s697_s7 + $0x64] ss:$8 sps:$4 sm:$0xff]  }
   0xb   :  { %150 = vmatprep.subr.bf16.mxu0 %v513_v0  ;;  %v222_v47 = vld [vmem:[%s700_s1] sm:$0x3]  ;;  %v510_v61 = vld [vmem:[%s697_s7 + $0x74] ss:$8 sps:$4 sm:$0xff]   ;;  %v508_v62 = vld [vmem:[%s697_s7 + $0x70] ss:$8 sps:$4 sm:$0xff]  }
   0xc   :  { %v487_v48 = vld [vmem:[%s697_s7] ss:$8 sps:$4 sm:$0xff]  }
   0xd   :  { %v493_v52 = vld [vmem:[%s697_s7 + $0x20] ss:$8 sps:$4 sm:$0xff]  }
   0xe   :  { %151 = vmatpush1.bf16.msra.mxu0 %v478_v4  ;;  %v499_v56 = vld [vmem:[%s697_s7 + $0x40] ss:$8 sps:$4 sm:$0xff]   ;;  %v291_v4 = vlaneseq }
   0xf   :  { %152 = vmatprep.subr.bf16.mxu0 %v513_v0  ;;  %v505_v60 = vld [vmem:[%s697_s7 + $0x60] ss:$8 sps:$4 sm:$0xff]  }
  0x10   :  { %v292_v5 = vshrl.u32 %v291_v4, 7 }
  0x12   :  { %153 = vmatpush1.bf16.msra.mxu0 %v479_v7  ;;  %v293_v6 = vsub.s32 0, %v292_v5  ;;  %v289_v7 = vld [vmem:[%s701_s8] sm:$0x3] }
  0x13   :  { %154 = vmatprep.subr.bf16.mxu0 %v513_v0 }
  0x16   :  { %155 = vmatpush1.bf16.msra.mxu0 %v480_v8  ;;  %v297_v8 = vsub.s32 1, %v292_v5 }
  0x17   :  { %156 = vmatprep.subr.bf16.mxu0 %v513_v0 }
  0x1a   :  { %157 = vmatpush1.bf16.msra.mxu0 %v481_v9  ;;  %v294_v9 = vrot.slane %v289_v7, %v293_v6 }
  0x1b   :  { %158 = vmatprep.subr.bf16.mxu0 %v513_v0 }
  0x1e   :  { %159 = vmatpush1.bf16.msra.mxu0 %v482_v10  ;;  %v298_v10 = vrot.slane %v289_v7, %v297_v8 }
  0x1f   :  { %160 = vmatprep.subr.bf16.mxu0 %v513_v0 }
  0x22   :  { %161 = vmatpush1.bf16.msra.mxu0 %v483_v11 }
  0x23   :  { %162 = vmatprep.subr.bf16.mxu0 %v513_v0 }
  0x26   :  { %163 = vmatpush1.bf16.msra.mxu0 %v484_v12 }
  0x27   :  { %164 = vmatprep.subr.bf16.mxu0 %v513_v0 }
  0x2a   :  { %165 = vmatpush1.bf16.msra.mxu0 %v485_v13 }
  0x2b   :  { %166 = vmatprep.subr.bf16.mxu0 %v513_v0 }
  0x2e   :  { %167 = vmatpush1.bf16.msra.mxu0 %v486_v14 }
  0x31   :  { %177 = vmatmul.mubr.bf16.vlgmr.msra.gmra.mrb[0].mxu0 %v35_v16 }
 0x104   :  { %v178_v18 = vpop.f32.mrb[0].mxu0 }
 0x105   :  { %v179_v19 = vadd.f32 %v431_v17, %v178_v18  ;;  %v180_v20 = vpop.f32.mrb[1].mxu0 }
 0x106   :  { %v181_v21 = vpop.f32.mrb[2].mxu0 }
 0x107   :  { %184 = vst [vmem:[#allocation2] sm:$0xff] %v179_v19  ;;  %v182_v22 = vpop.f32.mrb[3].mxu0 }
 0x10e   :  { %v185_v25 = vld [vmem:[#allocation2] sm:$0xf]  ;;  %v189_v26 = vld [vmem:[#allocation2 + $0x4] sm:$0xf] }
 0x10f   :  { %v187_v27 = vadd.f32 %v186_v23, %v185_v25  ;;  %v191_v28 = vadd.f32 %v190_v24, %v189_v26 }
 0x111   :  { %188 = vst [vmem:[#allocation2] sm:$0xf] %v187_v27  ;;  %192 = vst [vmem:[#allocation2 + $0x4] sm:$0xf] %v191_v28 }
 0x118   :  { %v193_v29 = vld [vmem:[#allocation2] sm:$0xff] }
 0x119   :  { %194 = vadd.xlane.f32.xlu0 %v193_v29 }
 0x1a6   :  { %v195_v30 = vpop.xlane.xlu0 %194 }
 0x1a7   :  { %v197_v31 = vmul.f32 0.0078125, %v195_v30 }
 0x1a9   :  { %v198_v32 = vsub.f32 %v193_v29, %v197_v31 }
 0x1ab   :  { %v199_v33 = vmul.f32 %v198_v32, %v198_v32 }
 0x1ad   :  { %200 = vadd.xlane.f32.xlu0 %v199_v33 }
 0x23a   :  { %v201_v35 = vpop.xlane.xlu0 %200 }
 0x23b   :  { %v202_v36 = vmul.f32 0.0078125, %v201_v35 }
 0x23d   :  { %v203_v37 = vadd.f32 1e-06, %v202_v36 }
 0x23f   :  { %511 = vrsqrt.f32 %v203_v37 }
 0x249   :  { %v512_v38 = vpop.eup %511 }
 0x24a   :  { %v205_v40 = vmul.f32 %v512_v38, %v198_v32 }
 0x24c   :  { %v213_v42 = vmul.f32 %v445_v39, %v205_v40 }
 0x24e   :  { %v221_v43 = vadd.f32 %v446_v41, %v213_v42 }
 0x250   :  { %v223_v44 = vpack.c.bf16 %v221_v43, %v221_v43 }
 0x252   :  { %v230_v46 = vsel %vm228_vm2, %v223_v44, 0 }
 0x253   :  { %467 = vmatpush3.bf16.msra.mxu1 %v230_v46 }
 0x254   :  { %381 = vmatprep.subr.bf16.mxu1 %v489_v45 }
 0x256   :  { %469 = vmatmul.mubr.msk.bf16.vlgmr.msra.gmra.mrb[0].mxu1 %vm224_vm3, %v222_v47 }
 0x257   :  { %382 = vmatpush1.bf16.msra.mxu1 %v487_v48  ;;  %413 = vmatprep.mubr.bf16.mxu1 %v513_v0 }
 0x258   :  { %383 = vmatprep.subr.bf16.mxu1 %v492_v49 }
 0x25b   :  { %384 = vmatpush1.bf16.msra.mxu1 %v490_v50 }
 0x25c   :  { %385 = vmatprep.subr.bf16.mxu1 %v495_v51 }
 0x25f   :  { %386 = vmatpush1.bf16.msra.mxu1 %v493_v52 }
 0x260   :  { %387 = vmatprep.subr.bf16.mxu1 %v498_v53 }
 0x263   :  { %388 = vmatpush1.bf16.msra.mxu1 %v496_v54 }
 0x264   :  { %389 = vmatprep.subr.bf16.mxu1 %v501_v55 }
 0x267   :  { %390 = vmatpush1.bf16.msra.mxu1 %v499_v56 }
 0x268   :  { %391 = vmatprep.subr.bf16.mxu1 %v504_v57 }
 0x26b   :  { %392 = vmatpush1.bf16.msra.mxu1 %v502_v58 }
 0x26c   :  { %393 = vmatprep.subr.bf16.mxu1 %v507_v59 }
 0x26f   :  { %394 = vmatpush1.bf16.msra.mxu1 %v505_v60 }
 0x270   :  { %395 = vmatprep.subr.bf16.mxu1 %v510_v61 }
 0x273   :  { %396 = vmatpush1.bf16.msra.mxu1 %v508_v62 }
 0x329   :  { %v266_v63 = vpop.f32.mrb[0].mxu1 }
 0x32a   :  { %v272_v0 = vpack.c.bf16 %v266_v63, %v266_v63  ;;  %v470_v1 = vpop.f32.mrb[1].mxu1 }
 0x32b   :  { %v269_v2 = vpop.f32.mrb[2].mxu1 }
 0x32c   :  { %v471_v3 = vpop.f32.mrb[3].mxu1  ;;  %414 = vmatmul.mubr.bf16.vlgmr.msra.gmra.mrb[4].mxu1 %v272_v0 }
 0x3ff   :  { %v415_v11 = vpop.f32.mrb[4].mxu1 }
 0x400   :  { %v416_v12 = vadd.f32 %v415_v11, %v294_v9  ;;  %v417_v13 = vpop.f32.mrb[5].mxu1 }
 0x401   :  { %v418_v14 = vadd.f32 %v417_v13, %v298_v10  ;;  %v419_v15 = vpop.f32.mrb[6].mxu1 }
 0x402   :  { %v420_v16 = vpop.f32.mrb[7].mxu1 }
 0x403   :  { %v424_v17 = vcombine.low %v416_v12, %v418_v14 }
 0x405   :  { %426 = vst [vmem:[%s702_s9] sm:$0xff] %v424_v17 }

</bundles_post_ra>
